<compile_context>
chip_gen: v7x
topology: tpu7x:2x2x1
jax: 0.10.0
libtpu: 0.0.40
codegen_flags: <defaults>
</compile_context>

<pallas_src>
import functools

import jax
import jax.numpy as jnp
from jax import lax
from jax.experimental import pallas as pl
from jax.experimental.pallas import tpu as pltpu


def _round_up(x, m):
    return ((x + m - 1) // m) * m


def _vmem_capacity_bytes():
    # 128 MiB on v5e/v6e, 64 MiB on v7x. Fall back to the smallest (v7x-safe).
    try:
        return int(pltpu.get_tpu_info().vmem_capacity_bytes)
    except Exception:
        return 64 * 1024 * 1024


def _pick_tiles(n, k, d_pad, in_itemsize, compute_itemsize, budget_bytes):
    """Choose (tile_n, tile_k) so the double-buffered working set fits VMEM."""
    tile_n = min(256, _round_up(n, 8))
    tile_k = min(512, _round_up(k, 128))

    def working_set(tn, tk):
        db_in = 2 * (2 * tn + tk) * d_pad * in_itemsize   # double-buffered q, p, keys
        cached_q = tn * d_pad * compute_itemsize          # normalized+scaled q scratch
        logits = tn * tk * 4                              # f32 logits tile
        small = 5 * tn * 4                                # m / l / pos scratch + out block
        return db_in + cached_q + logits + small

    while tile_k > 128 and working_set(tile_n, tile_k) > budget_bytes:
        tile_k = max(128, tile_k // 2)
    while tile_n > 8 and working_set(tile_n, tile_k) > budget_bytes:
        tile_n = max(8, tile_n // 2)
    return tile_n, tile_k


def _pad2d(x, rows, cols):
    r, c = x.shape
    if r == rows and c == cols:
        return x
    return jnp.pad(x, ((0, rows - r), (0, cols - c)))


def _info_nce_kernel(q_ref, p_ref, k_ref, out_ref,
                     qn_ref, m_ref, l_ref, pos_ref,
                     *, inv_t, k_valid, tile_k, mask_k, init_l, compute_dtype):
    """One (row-tile i, key-tile j) step of the InfoNCE forward pass."""
    j = pl.program_id(1)

    @pl.when(j == 0)
    def _init():
        # Normalize q and p in f32; rsqrt goes to the EUP, the divide becomes a
        # multiply. Fold 1/temperature and 1/||q|| into q so the (TN, TK) logits
        # tile never needs a rescaling pass.
        q = q_ref[...].astype(jnp.float32)
        p = p_ref[...].astype(jnp.float32)
        q_scale = lax.rsqrt(jnp.maximum(jnp.sum(q * q, axis=-1, keepdims=True),
                                        1e-24)) * inv_t
        p_scale = lax.rsqrt(jnp.maximum(jnp.sum(p * p, axis=-1, keepdims=True),
                                        1e-24))
        qn = q * q_scale
        pn = p * p_scale
        pos = jnp.sum(qn * pn, axis=-1, keepdims=True)          # (TN, 1) = (q.p)/(|q||p| t)
        qn_ref[...] = qn.astype(compute_dtype)
        pos_ref[...] = pos
        # Online-softmax state. Seeding m with the positive logit keeps the running
        # max finite. init_l = 1.0 in unpaired mode (the positive is an extra,
        # prepended column: exp(pos - pos) = 1); 0.0 in self-negatives mode (the
        # diagonal is already one of the streamed columns).
        m_ref[...] = pos
        l_ref[...] = jnp.full_like(pos, init_l)

    # Normalize this tile of keys (negatives, or positives acting as negatives).
    k = k_ref[...].astype(jnp.float32)
    k_scale = lax.rsqrt(jnp.maximum(jnp.sum(k * k, axis=-1, keepdims=True), 1e-24))
    kn = (k * k_scale).astype(compute_dtype)                    # (TK, D)

    # Transpose-free logits: contract the last dim of both operands on the MXU.
    logits = lax.dot_general(qn_ref[...], kn,
                             dimension_numbers=(((1,), (1,)), ((), ())),
                             preferred_element_type=jnp.float32)   # (TN, TK)
    if mask_k:  # only traced when the key axis was actually padded
        col = j * tile_k + lax.broadcasted_iota(jnp.int32, logits.shape, 1)
        logits = jnp.where(col < k_valid, logits, -1e30)

    # Online logsumexp update.
    m_prev = m_ref[...]
    m_new = jnp.maximum(m_prev, jnp.max(logits, axis=-1, keepdims=True))
    alpha = jnp.exp(m_prev - m_new)
    l_ref[...] = alpha * l_ref[...] + jnp.sum(jnp.exp(logits - m_new),
                                              axis=-1, keepdims=True)
    m_ref[...] = m_new

    @pl.when(j == pl.num_programs(1) - 1)
    def _finalize():
        # loss_i = logsumexp(logits_i) - positive_logit_i
        out_ref[...] = (m_ref[...] + jnp.log(l_ref[...])) - pos_ref[...]


class InfoNCE:
    """JAX/Pallas port of the PyTorch InfoNCE module (forward pass)."""

    def __init__(self, temperature=0.1, reduction="mean", negative_mode="unpaired"):
        if reduction not in ("none", "sum", "mean"):
            raise ValueError("reduction must be one of ['none', 'sum', 'mean'].")
        if negative_mode not in ("unpaired", "paired"):
            raise ValueError("negative_mode must be one of ['paired', 'unpaired'].")
        self.temperature = float(temperature)
        self.reduction = reduction
        self.negative_mode = negative_mode

    def __call__(self, query, positive_key, negative_keys=None):
        if query.ndim != 2:
            raise ValueError("<query> must have 2 dimensions.")
        if positive_key.ndim != 2:
            raise ValueError("<positive_key> must have 2 dimensions.")
        if query.shape[0] != positive_key.shape[0]:
            raise ValueError("<query> and <positive_key> must have the same number of samples.")
        if query.shape[-1] != positive_key.shape[-1]:
            raise ValueError("<query> and <positive_key> must have the same embedding dim.")
        if negative_keys is not None:
            if self.negative_mode == "paired":
                # TODO(synk): negative_mode='paired' ((N, M, D) batched negatives) not implemented.
                raise NotImplementedError("negative_mode='paired' is not implemented.")
            if negative_keys.ndim != 2:
                raise ValueError("<negative_keys> must have 2 dimensions (unpaired mode).")
            if query.shape[-1] != negative_keys.shape[-1]:
                raise ValueError("<query> and <negative_keys> must have the same embedding dim.")

        n, d = query.shape
        if negative_keys is not None:
            keys, k, init_l = negative_keys, negative_keys.shape[0], 1.0
        else:
            keys, k, init_l = positive_key, n, 0.0

        # bf16 inputs feed the MXU in bf16 (f32 accumulation); everything else in f32.
        compute_dtype = jnp.bfloat16 if query.dtype == jnp.bfloat16 else jnp.float32

        d_pad = _round_up(d, 128)
        vmem_cap = _vmem_capacity_bytes()
        tile_n, tile_k = _pick_tiles(
            n, k, d_pad,
            in_itemsize=query.dtype.itemsize,
            compute_itemsize=jnp.dtype(compute_dtype).itemsize,
            budget_bytes=vmem_cap // 4)
        n_pad = _round_up(n, tile_n)
        k_pad = _round_up(k, tile_k)

        # Zero padding is safe for the sum-of-squares and the dot products; padded
        # key columns are masked in-kernel, padded query rows are sliced off below.
        q_p = _pad2d(query, n_pad, d_pad)
        p_p = _pad2d(positive_key, n_pad, d_pad)
        k_p = _pad2d(keys, k_pad, d_pad)

        kernel = functools.partial(
            _info_nce_kernel,
            inv_t=1.0 / self.temperature,
            k_valid=int(k),
            tile_k=int(tile_k),
            mask_k=bool(k_pad != k),
            init_l=float(init_l),
            compute_dtype=compute_dtype,
        )

        grid = (n_pad // tile_n, k_pad // tile_k)
        per_row = pl.pallas_call(
            kernel,
            out_shape=jax.ShapeDtypeStruct((n_pad, 1), jnp.float32),
            grid_spec=pltpu.PrefetchScalarGridSpec(
                num_scalar_prefetch=0,
                grid=grid,
                in_specs=[
                    pl.BlockSpec((tile_n, d_pad), lambda i, j: (i, 0)),  # query rows
                    pl.BlockSpec((tile_n, d_pad), lambda i, j: (i, 0)),  # positives (rows)
                    pl.BlockSpec((tile_k, d_pad), lambda i, j: (j, 0)),  # streamed keys
                ],
                out_specs=pl.BlockSpec((tile_n, 1), lambda i, j: (i, 0)),
                scratch_shapes=[
                    pltpu.VMEM((tile_n, d_pad), compute_dtype),  # normalized+scaled q
                    pltpu.VMEM((tile_n, 1), jnp.float32),        # running max m
                    pltpu.VMEM((tile_n, 1), jnp.float32),        # running sum-exp l
                    pltpu.VMEM((tile_n, 1), jnp.float32),        # positive logit
                ],
            ),
            compiler_params=pltpu.CompilerParams(
                dimension_semantics=("parallel", "arbitrary"),
                vmem_limit_bytes=min(vmem_cap // 2, 64 * 1024 * 1024),
            ),
        )(q_p, p_p, k_p)

        losses = per_row[:n, 0]
        if self.reduction == "mean":
            return jnp.mean(losses)
        if self.reduction == "sum":
            return jnp.sum(losses)
        return losses


def _info_nce_ref(query, positive_key, negative_keys, temperature):
    """Pure-JAX reference matching the PyTorch semantics (mean reduction)."""
    def norm(x):
        nrm = jnp.sqrt(jnp.sum(x * x, axis=-1, keepdims=True))
        return x / jnp.maximum(nrm, 1e-12)

    q = norm(query.astype(jnp.float32))
    p = norm(positive_key.astype(jnp.float32))
    if negative_keys is not None:
        nk = norm(negative_keys.astype(jnp.float32))
        pos = jnp.sum(q * p, axis=1, keepdims=True)
        neg = q @ nk.T
        logits = jnp.concatenate([pos, neg], axis=1) / temperature
        labels = jnp.zeros((logits.shape[0],), dtype=jnp.int32)
    else:
        logits = (q @ p.T) / temperature
        labels = jnp.arange(q.shape[0], dtype=jnp.int32)
    lse = jax.nn.logsumexp(logits, axis=-1)
    picked = jnp.take_along_axis(logits, labels[:, None], axis=1)[:, 0]
    return jnp.mean(lse - picked)


if __name__ == "__main__":
    # Small shapes consistent with the module's input contract.
    N, M, D = 8, 16, 32  # batch, num_negatives, embedding_size
    key = jax.random.PRNGKey(0)
    kq, kp, kn = jax.random.split(key, 3)
    query = jax.random.normal(kq, (N, D), dtype=jnp.float32)
    positive_key = jax.random.normal(kp, (N, D), dtype=jnp.float32)
    negative_keys = jax.random.normal(kn, (M, D), dtype=jnp.float32)

    loss_fn = InfoNCE(temperature=0.1, reduction="mean", negative_mode="unpaired")

    # Case 1: explicit unpaired negative keys.
    out_unpaired = jax.block_until_ready(loss_fn(query, positive_key, negative_keys))
    ref_unpaired = _info_nce_ref(query, positive_key, negative_keys, 0.1)

    # Case 2: negative_keys is None (other positives act as negatives).
    out_self = jax.block_until_ready(loss_fn(query, positive_key, None))
    ref_self = _info_nce_ref(query, positive_key, None, 0.1)

    assert jnp.allclose(out_unpaired, ref_unpaired, rtol=1e-4, atol=1e-4), (
        out_unpaired, ref_unpaired)
    assert jnp.allclose(out_self, ref_self, rtol=1e-4, atol=1e-4), (out_self, ref_self)

    print("KERNEL_OK")
</pallas_src>

<mosaic_0001>
module attributes {stable_mosaic.version = 11 : i64} {
  func.func @_info_nce_kernel(%arg0: i32, %arg1: i32, %arg2: memref<8x128xf32, #tpu.memory_space<vmem>>, %arg3: memref<8x128xf32, #tpu.memory_space<vmem>>, %arg4: memref<128x128xf32, #tpu.memory_space<vmem>>, %arg5: memref<8x1xf32, #tpu.memory_space<vmem>>, %arg6: memref<8x128xf32, #tpu.memory_space<vmem>>, %arg7: memref<8x1xf32, #tpu.memory_space<vmem>>, %arg8: memref<8x1xf32, #tpu.memory_space<vmem>>, %arg9: memref<8x1xf32, #tpu.memory_space<vmem>>) attributes {dimension_semantics = [#tpu.dimension_semantics<parallel>, #tpu.dimension_semantics<arbitrary>], iteration_bounds = array<i64: 1, 1>, scalar_prefetch = 0 : i64, scratch_operands = 4 : i64, tpu.core_type = #tpu.core_type<tc>, window_params = [{transform_indices = @transform_0, window_bounds = array<i64: 8, 128>}, {transform_indices = @transform_1, window_bounds = array<i64: 8, 128>}, {transform_indices = @transform_2, window_bounds = array<i64: 128, 128>}, {transform_indices = @transform_3, window_bounds = array<i64: 8, 1>}]} {
    %c0_i32 = arith.constant 0 : i32
    %0 = arith.cmpi eq, %arg1, %c0_i32 : i32
    %1 = arith.extui %0 : i1 to i32
    %c0_i32_0 = arith.constant 0 : i32
    %2 = arith.cmpi ne, %1, %c0_i32_0 : i32
    scf.if %2 {
      %c0_19 = arith.constant 0 : index
      %c0_20 = arith.constant 0 : index
      %41 = vector.load %arg2[%c0_19, %c0_20] : memref<8x128xf32, #tpu.memory_space<vmem>>, vector<8x128xf32>
      %c0_21 = arith.constant 0 : index
      %c0_22 = arith.constant 0 : index
      %42 = vector.load %arg3[%c0_21, %c0_22] : memref<8x128xf32, #tpu.memory_space<vmem>>, vector<8x128xf32>
      %43 = arith.mulf %41, %41 : vector<8x128xf32>
      %cst_23 = arith.constant dense<0.000000e+00> : vector<8xf32>
      %44 = vector.multi_reduction <add>, %43, %cst_23 [1] : vector<8x128xf32> to vector<8xf32>
      %45 = vector.shape_cast %44 : vector<8xf32> to vector<8x1xf32>
      %cst_24 = arith.constant 1.000000e-24 : f32
      %46 = vector.broadcast %cst_24 : f32 to vector<8x1xf32>
      %47 = arith.maximumf %45, %46 : vector<8x1xf32>
      %48 = math.rsqrt %47 : vector<8x1xf32>
      %cst_25 = arith.constant 1.000000e+01 : f32
      %49 = vector.broadcast %cst_25 : f32 to vector<8x1xf32>
      %50 = arith.mulf %48, %49 : vector<8x1xf32>
      %51 = arith.mulf %42, %42 : vector<8x128xf32>
      %cst_26 = arith.constant dense<0.000000e+00> : vector<8xf32>
      %52 = vector.multi_reduction <add>, %51, %cst_26 [1] : vector<8x128xf32> to vector<8xf32>
      %53 = vector.shape_cast %52 : vector<8xf32> to vector<8x1xf32>
      %cst_27 = arith.constant 1.000000e-24 : f32
      %54 = vector.broadcast %cst_27 : f32 to vector<8x1xf32>
      %55 = arith.maximumf %53, %54 : vector<8x1xf32>
      %56 = math.rsqrt %55 : vector<8x1xf32>
      %57 = vector.broadcast %50 : vector<8x1xf32> to vector<8x128xf32>
      %58 = arith.mulf %41, %57 : vector<8x128xf32>
      %59 = vector.broadcast %56 : vector<8x1xf32> to vector<8x128xf32>
      %60 = arith.mulf %42, %59 : vector<8x128xf32>
      %61 = arith.mulf %58, %60 : vector<8x128xf32>
      %cst_28 = arith.constant dense<0.000000e+00> : vector<8xf32>
      %62 = vector.multi_reduction <add>, %61, %cst_28 [1] : vector<8x128xf32> to vector<8xf32>
      %63 = vector.shape_cast %62 : vector<8xf32> to vector<8x1xf32>
      %c0_29 = arith.constant 0 : index
      %c0_30 = arith.constant 0 : index
      %64 = vector.load %arg6[%c0_29, %c0_30] : memref<8x128xf32, #tpu.memory_space<vmem>>, vector<8x128xf32>
      tpu.vector_store %arg6[%c0_29, %c0_30], %58 {strides = array<i32>} : memref<8x128xf32, #tpu.memory_space<vmem>>, vector<8x128xf32>,
      %c0_31 = arith.constant 0 : index
      %c0_32 = arith.constant 0 : index
      %65 = vector.load %arg9[%c0_31, %c0_32] : memref<8x1xf32, #tpu.memory_space<vmem>>, vector<8x1xf32>
      tpu.vector_store %arg9[%c0_31, %c0_32], %63 {strides = array<i32>} : memref<8x1xf32, #tpu.memory_space<vmem>>, vector<8x1xf32>,
      %c0_33 = arith.constant 0 : index
      %c0_34 = arith.constant 0 : index
      %66 = vector.load %arg7[%c0_33, %c0_34] : memref<8x1xf32, #tpu.memory_space<vmem>>, vector<8x1xf32>
      tpu.vector_store %arg7[%c0_33, %c0_34], %63 {strides = array<i32>} : memref<8x1xf32, #tpu.memory_space<vmem>>, vector<8x1xf32>,
      %cst_35 = arith.constant 1.000000e+00 : f32
      %67 = vector.broadcast %cst_35 : f32 to vector<8x1xf32>
      %c0_36 = arith.constant 0 : index
      %c0_37 = arith.constant 0 : index
      %68 = vector.load %arg8[%c0_36, %c0_37] : memref<8x1xf32, #tpu.memory_space<vmem>>, vector<8x1xf32>
      tpu.vector_store %arg8[%c0_36, %c0_37], %67 {strides = array<i32>} : memref<8x1xf32, #tpu.memory_space<vmem>>, vector<8x1xf32>,
    } else {
    }
    %c0 = arith.constant 0 : index
    %c0_1 = arith.constant 0 : index
    %3 = vector.load %arg4[%c0, %c0_1] : memref<128x128xf32, #tpu.memory_space<vmem>>, vector<128x128xf32>
    %4 = arith.mulf %3, %3 : vector<128x128xf32>
    %cst = arith.constant dense<0.000000e+00> : vector<128xf32>
    %5 = vector.multi_reduction <add>, %4, %cst [1] : vector<128x128xf32> to vector<128xf32>
    %6 = vector.shape_cast %5 : vector<128xf32> to vector<128x1xf32>
    %cst_2 = arith.constant 1.000000e-24 : f32
    %7 = vector.broadcast %cst_2 : f32 to vector<128x1xf32>
    %8 = arith.maximumf %6, %7 : vector<128x1xf32>
    %9 = math.rsqrt %8 : vector<128x1xf32>
    %10 = vector.broadcast %9 : vector<128x1xf32> to vector<128x128xf32>
    %11 = arith.mulf %3, %10 : vector<128x128xf32>
    %c0_3 = arith.constant 0 : index
    %c0_4 = arith.constant 0 : index
    %12 = vector.load %arg6[%c0_3, %c0_4] : memref<8x128xf32, #tpu.memory_space<vmem>>, vector<8x128xf32>
    %cst_5 = arith.constant dense<0.000000e+00> : vector<8x128xf32>
    %13 = tpu.matmul %12, %11, %cst_5 {dimension_numbers = #tpu.dot_dimension_numbers<[1], [1], [0], [0], [0, 0, 1, 0], [], []>} : vector<8x128xf32>, vector<128x128xf32>, vector<8x128xf32> -> vector<8x128xf32>
    %c128_i32 = arith.constant 128 : i32
    %14 = arith.muli %arg1, %c128_i32 : i32
    %15 = tpu.iota {dimensions = array<i32: 1>} : vector<8x128xi32>
    %16 = vector.broadcast %14 : i32 to vector<8x128xi32>
    %17 = arith.addi %16, %15 : vector<8x128xi32>
    %c16_i32 = arith.constant 16 : i32
    %18 = vector.broadcast %c16_i32 : i32 to vector<8x128xi32>
    %19 = arith.cmpi slt, %17, %18 : vector<8x128xi32>
    %cst_6 = arith.constant -1.000000e+30 : f32
    %20 = vector.broadcast %cst_6 : f32 to vector<8x128xf32>
    %21 = arith.select %19, %13, %20 : vector<8x128xi1>, vector<8x128xf32>
    %c0_7 = arith.constant 0 : index
    %c0_8 = arith.constant 0 : index
    %22 = vector.load %arg7[%c0_7, %c0_8] : memref<8x1xf32, #tpu.memory_space<vmem>>, vector<8x1xf32>
    %cst_9 = arith.constant dense<0xFF800000> : vector<8xf32>
    %23 = vector.multi_reduction <maximumf>, %21, %cst_9 [1] : vector<8x128xf32> to vector<8xf32>
    %24 = vector.shape_cast %23 : vector<8xf32> to vector<8x1xf32>
    %25 = arith.maximumf %22, %24 : vector<8x1xf32>
    %26 = arith.subf %22, %25 : vector<8x1xf32>
    %27 = math.exp %26 : vector<8x1xf32>
    %c0_10 = arith.constant 0 : index
    %c0_11 = arith.constant 0 : index
    %28 = vector.load %arg8[%c0_10, %c0_11] : memref<8x1xf32, #tpu.memory_space<vmem>>, vector<8x1xf32>
    %29 = arith.mulf %27, %28 : vector<8x1xf32>
    %30 = vector.broadcast %25 : vector<8x1xf32> to vector<8x128xf32>
    %31 = arith.subf %21, %30 : vector<8x128xf32>
    %32 = math.exp %31 : vector<8x128xf32>
    %cst_12 = arith.constant dense<0.000000e+00> : vector<8xf32>
    %33 = vector.multi_reduction <add>, %32, %cst_12 [1] : vector<8x128xf32> to vector<8xf32>
    %34 = vector.shape_cast %33 : vector<8xf32> to vector<8x1xf32>
    %35 = arith.addf %29, %34 : vector<8x1xf32>
    %c0_13 = arith.constant 0 : index
    %c0_14 = arith.constant 0 : index
    %36 = vector.load %arg8[%c0_13, %c0_14] : memref<8x1xf32, #tpu.memory_space<vmem>>, vector<8x1xf32>
    tpu.vector_store %arg8[%c0_13, %c0_14], %35 {strides = array<i32>} : memref<8x1xf32, #tpu.memory_space<vmem>>, vector<8x1xf32>,
    %c0_15 = arith.constant 0 : index
    %c0_16 = arith.constant 0 : index
    %37 = vector.load %arg7[%c0_15, %c0_16] : memref<8x1xf32, #tpu.memory_space<vmem>>, vector<8x1xf32>
    tpu.vector_store %arg7[%c0_15, %c0_16], %25 {strides = array<i32>} : memref<8x1xf32, #tpu.memory_space<vmem>>, vector<8x1xf32>,
    %c0_i32_17 = arith.constant 0 : i32
    %38 = arith.cmpi eq, %arg1, %c0_i32_17 : i32
    %39 = arith.extui %38 : i1 to i32
    %c0_i32_18 = arith.constant 0 : i32
    %40 = arith.cmpi ne, %39, %c0_i32_18 : i32
    scf.if %40 {
      %c0_19 = arith.constant 0 : index
      %c0_20 = arith.constant 0 : index
      %41 = vector.load %arg7[%c0_19, %c0_20] : memref<8x1xf32, #tpu.memory_space<vmem>>, vector<8x1xf32>
      %c0_21 = arith.constant 0 : index
      %c0_22 = arith.constant 0 : index
      %42 = vector.load %arg8[%c0_21, %c0_22] : memref<8x1xf32, #tpu.memory_space<vmem>>, vector<8x1xf32>
      %43 = math.log %42 : vector<8x1xf32>
      %44 = arith.addf %41, %43 : vector<8x1xf32>
      %c0_23 = arith.constant 0 : index
      %c0_24 = arith.constant 0 : index
      %45 = vector.load %arg9[%c0_23, %c0_24] : memref<8x1xf32, #tpu.memory_space<vmem>>, vector<8x1xf32>
      %46 = arith.subf %44, %45 : vector<8x1xf32>
      %c0_25 = arith.constant 0 : index
      %c0_26 = arith.constant 0 : index
      %47 = vector.load %arg5[%c0_25, %c0_26] : memref<8x1xf32, #tpu.memory_space<vmem>>, vector<8x1xf32>
      tpu.vector_store %arg5[%c0_25, %c0_26], %46 {strides = array<i32>} : memref<8x1xf32, #tpu.memory_space<vmem>>, vector<8x1xf32>,
    } else {
    }
    return
  }
  func.func @transform_0(%arg0: i32, %arg1: i32) -> (i32, i32) {
    %c0_i32 = arith.constant 0 : i32
    %c0_i32_0 = arith.constant 0 : i32
    return %arg0, %c0_i32 : i32, i32
  }
  func.func @transform_1(%arg0: i32, %arg1: i32) -> (i32, i32) {
    %c0_i32 = arith.constant 0 : i32
    %c0_i32_0 = arith.constant 0 : i32
    return %arg0, %c0_i32 : i32, i32
  }
  func.func @transform_2(%arg0: i32, %arg1: i32) -> (i32, i32) {
    %c0_i32 = arith.constant 0 : i32
    %c0_i32_0 = arith.constant 0 : i32
    return %arg1, %c0_i32 : i32, i32
  }
  func.func @transform_3(%arg0: i32, %arg1: i32) -> (i32, i32) {
    %c0_i32 = arith.constant 0 : i32
    %c0_i32_0 = arith.constant 0 : i32
    return %arg0, %c0_i32 : i32, i32
  }
}

</mosaic_0001>

<bundles_post_ra>
// kernel: tpu_custom_call.1
= control target key start
LH: loop header
LB: loop body
LE: loop exit
PB: predicated region body
PF: predicated region fallthrough
CT: control target
= control target key end

     0   :  { %8 = vsyncpa [#allocation7], 0  ;;  %s680_s0 = inlined_call_operand.hbm [shape: f32[8,128], index: 0, kind: input, shape index: {}]   ;;  %s681_s1 = inlined_call_operand.hbm [shape: f32[8,128], index: 1, kind: input, shape index: {}]   ;;  %s682_s2 = inlined_call_operand.hbm [shape: f32[128,128], index: 2, kind: input, shape index: {}]   ;;  %s683_s3 = inlined_call_operand.vmem [shape: f32[8,1], index: 3, kind: output, shape index: {}]  }
   0x1   :  { %9 = vsyncpa [#allocation9], 0  ;;  %s507_s12 = smov [#allocation8]   ;;  %s508_s14 = smov [#allocation6]  }
   0x2   :  { %s26_s13 = sshll.u32 %s507_s12, 4  ;;  %s16_s15 = sshll.u32 %s508_s14, 4  ;;  %s27_s13 = int_to_ptr.vmem [resolvable:$true] %s26_s13  ;;  %s17_s15 = int_to_ptr.vmem [resolvable:$true] %s16_s15 }
   0x3   :  { %s437_s18 = scalar_lea.hbm %s681_s1, 128 }
   0x4   :  { %p438_p0 = scmp.ne.s32.totalorder %s681_s1, %s437_s18  ;;  %p441_p1 = scmp.lt.u32.totalorder %s437_s18, %s681_s1 }
   0x6   :  { %p443_p2 = pnand %p441_p1, %p438_p0 }
   0x8   :  { %446 = shalt.err (!%p443_p2)
}
   0x9   :  { %s447_s23 = scalar_lea.vmem %s27_s13, 128  ;;  %p452_p4 = scmp.lt.s32.totalorder %s27_s13, %s27_s13 }
   0xa   :  { %p448_p3 = scmp.ne.s32.totalorder %s27_s13, %s447_s23  ;;  %p453_p5 = scmp.lt.s32.totalorder %s447_s23, %s447_s23 }
   0xc   :  { %p454_p6 = por %p453_p5, %p452_p4 }
   0xe   :  { %p455_p7 = pnand %p454_p6, %p448_p3 }
  0x10   :  { %458 = shalt.err (!%p455_p7)
}
  0x11   :  { %29 = dma.hbm_to_vmem [thread:$0]  %s681_s1, 128, %s27_s13, [#allocation9]  }
  0x12   :  { %s459_s28 = scalar_lea.hbm %s680_s0, 128 }
  0x13   :  { %p460_p8 = scmp.ne.s32.totalorder %s680_s0, %s459_s28  ;;  %p463_p9 = scmp.lt.u32.totalorder %s459_s28, %s680_s0 }
  0x15   :  { %p465_p10 = pnand %p463_p9, %p460_p8 }
  0x17   :  { %468 = shalt.err (!%p465_p10)
}
  0x18   :  { %s469_s6 = scalar_lea.vmem %s17_s15, 128  ;;  %p474_p12 = scmp.lt.s32.totalorder %s17_s15, %s17_s15 }
  0x19   :  { %p470_p11 = scmp.ne.s32.totalorder %s17_s15, %s469_s6  ;;  %p475_p13 = scmp.lt.s32.totalorder %s469_s6, %s469_s6 }
  0x1b   :  { %p476_p0 = por %p475_p13, %p474_p12 }
  0x1d   :  { %p477_p1 = pnand %p476_p0, %p470_p11 }
  0x1f   :  { %480 = shalt.err (!%p477_p1)
}
  0x20   :  { %19 = dma.hbm_to_vmem [thread:$0]  %s680_s0, 128, %s17_s15, [#allocation7]  }
  0x21   :  { %s509_s8 = smov [#allocation10]   ;;  %s481_s12 = scalar_lea.hbm %s682_s2, 2048 }
  0x22   :  { %s35_s9 = sshll.u32 %s509_s8, 4  ;;  %p482_p2 = scmp.ne.s32.totalorder %s682_s2, %s481_s12  ;;  %s36_s9 = int_to_ptr.vmem [resolvable:$true] %s35_s9 }
  0x23   :  { %p485_p3 = scmp.lt.u32.totalorder %s481_s12, %s682_s2 }
  0x25   :  { %p487_p4 = pnand %p485_p3, %p482_p2 }
  0x27   :  { %490 = shalt.err (!%p487_p4)
}
  0x28   :  { %s491_s18 = scalar_lea.vmem %s36_s9, 2048  ;;  %p496_p6 = scmp.lt.s32.totalorder %s36_s9, %s36_s9 }
  0x29   :  { %p492_p5 = scmp.ne.s32.totalorder %s36_s9, %s491_s18  ;;  %p497_p7 = scmp.lt.s32.totalorder %s491_s18, %s491_s18 }
  0x2b   :  { %p498_p8 = por %p497_p7, %p496_p6 }
  0x2d   :  { %p499_p9 = pnand %p498_p8, %p492_p5 }
  0x2f   :  { %502 = shalt.err (!%p499_p9)
}
  0x30   :  { %s510_s0 = smov 128   ;;  %s511_s15 = smov 8  }
  0x31   :  { %41 = dma.hbm_to_vmem [thread:$0]  %s682_s2, 2048, %s36_s9, [#allocation9], %s510_s0, %s510_s0, %s511_s15  }
  0x32   :  { %503 = dma.done.wait [#allocation7], 128  }
  0x33   :  { %504 = vsyncadd [#allocation7], 4294967168 }
  0x34   :  { %505 = dma.done.wait [#allocation9], 2176  }
  0x35   :  { %506 = vsyncadd [#allocation9], 4294965120  ;;  %v573_v0 = vld [vmem:[#allocation10] sm:$0xff]  ;;  %v575_v1 = vld [vmem:[#allocation10 + $0x10] sm:$0xff]  ;;  %v512_v34 = vmov 0.0|0.0   ;;  %vm513_vm0 = vmmov 0  }
  0x36   :  { %v577_v2 = vld [vmem:[#allocation10 + $0x8] sm:$0xff]  ;;  %v94_v3 = vmul.f32 %v573_v0, %v573_v0  ;;  %v96_v4 = vmul.f32 %v575_v1, %v575_v1  ;;  %v583_v5 = vld [vmem:[#allocation10 + $0x18] sm:$0xff]  ;;  %v591_v9 = vld [vmem:[#allocation10 + $0x20] sm:$0xff]  ;;  %360 = vmatprep.subr.bf16.mxu0 %v512_v34  ;;  %v514_v37 = vmov 0.0   ;;  %vm74_vm1 = vcmask 7168  }
  0x37   :  { %v95_v6 = vmul.f32 %v577_v2, %v577_v2  ;;  %v97_v7 = vmul.f32 %v583_v5, %v583_v5  ;;  %v589_v8 = vld [vmem:[#allocation10 + $0x28] sm:$0xff]  ;;  %v98_v11 = vmul.f32 %v591_v9, %v591_v9  ;;  %v597_v12 = vld [vmem:[#allocation10 + $0x38] sm:$0xff]  ;;  %v599_v13 = vld [vmem:[#allocation10 + $0x30] sm:$0xff]  ;;  %357 = vmatprep.mubr.msk.f32.mxu0 %vm513_vm0, %v514_v37 }
  0x38   :  { %110 = vadd.xlane.f32.xlu0 %v94_v3  ;;  %114 = vadd.xlane.f32.xlu1 %v96_v4  ;;  %v99_v10 = vmul.f32 %v589_v8, %v589_v8  ;;  %v101_v14 = vmul.f32 %v597_v12, %v597_v12  ;;  %v100_v15 = vmul.f32 %v599_v13, %v599_v13  ;;  %v605_v16 = vld [vmem:[#allocation10 + $0x48] sm:$0xff]  ;;  %v607_v17 = vld [vmem:[#allocation10 + $0x40] sm:$0xff]  ;;  %v613_v20 = vld [vmem:[#allocation10 + $0x58] sm:$0xff] }
  0x39   :  { %v103_v18 = vmul.f32 %v605_v16, %v605_v16  ;;  %v102_v19 = vmul.f32 %v607_v17, %v607_v17  ;;  %v615_v21 = vld [vmem:[#allocation10 + $0x50] sm:$0xff]  ;;  %v105_v22 = vmul.f32 %v613_v20, %v613_v20  ;;  %v621_v24 = vld [vmem:[#allocation10 + $0x68] sm:$0xff]  ;;  %v623_v25 = vld [vmem:[#allocation10 + $0x60] sm:$0xff] }
  0x3a   :  { %v104_v23 = vmul.f32 %v615_v21, %v615_v21  ;;  %v107_v26 = vmul.f32 %v621_v24, %v621_v24  ;;  %v106_v27 = vmul.f32 %v623_v25, %v623_v25  ;;  %v629_v28 = vld [vmem:[#allocation10 + $0x78] sm:$0xff]  ;;  %v631_v29 = vld [vmem:[#allocation10 + $0x70] sm:$0xff] }
  0x3b   :  { %v109_v30 = vmul.f32 %v629_v28, %v629_v28  ;;  %v108_v31 = vmul.f32 %v631_v29, %v631_v29  ;;  %v637_v32 = vld [vmem:[#allocation6] sm:$0xff]  ;;  %v639_v33 = vld [vmem:[#allocation8] sm:$0xff] }
  0x3c   :  { %112 = vadd.xlane.f32.xlu0 %v95_v6  ;;  %116 = vadd.xlane.f32.xlu1 %v97_v7  ;;  %v57_v35 = vmul.f32 %v637_v32, %v637_v32  ;;  %v63_v36 = vmul.f32 %v639_v33, %v639_v33 }
  0x40   :  { %120 = vadd.xlane.f32.xlu1 %v99_v10  ;;  %118 = vadd.xlane.f32.xlu0 %v98_v11 }
  0x44   :  { %124 = vadd.xlane.f32.xlu1 %v101_v14  ;;  %122 = vadd.xlane.f32.xlu0 %v100_v15 }
  0x48   :  { %128 = vadd.xlane.f32.xlu1 %v103_v18  ;;  %126 = vadd.xlane.f32.xlu0 %v102_v19 }
  0x4c   :  { %132 = vadd.xlane.f32.xlu1 %v105_v22  ;;  %130 = vadd.xlane.f32.xlu0 %v104_v23 }
  0x50   :  { %136 = vadd.xlane.f32.xlu1 %v107_v26  ;;  %134 = vadd.xlane.f32.xlu0 %v106_v27 }
  0x54   :  { %140 = vadd.xlane.f32.xlu1 %v109_v30  ;;  %138 = vadd.xlane.f32.xlu0 %v108_v31 }
  0x58   :  { %58 = vadd.xlane.f32.xlu0 %v57_v35  ;;  %64 = vadd.xlane.f32.xlu1 %v63_v36 }
  0xc5   :  { %v111_v38 = vpop.xlane.xlu0 %110  ;;  %v115_v39 = vpop.xlane.xlu1 %114 }
  0xc6   :  { %v142_v40 = vmax.f32 %v111_v38, 1e-24  ;;  %v144_v44 = vmax.f32 %v115_v39, 1e-24 }
  0xc8   :  { %395 = vrsqrt.f32 %v142_v40 }
  0xc9   :  { %v113_v41 = vpop.xlane.xlu0 %112  ;;  %v117_v42 = vpop.xlane.xlu1 %116 }
  0xca   :  { %v143_v43 = vmax.f32 %v113_v41, 1e-24  ;;  %v145_v45 = vmax.f32 %v117_v42, 1e-24 }
  0xcc   :  { %397 = vrsqrt.f32 %v143_v43 }
  0xcd   :  { %v121_v46 = vpop.xlane.xlu1 %120  ;;  %v119_v47 = vpop.xlane.xlu0 %118  ;;  %399 = vrsqrt.f32 %v144_v44 }
  0xce   :  { %401 = vrsqrt.f32 %v145_v45  ;;  %v147_v48 = vmax.f32 %v121_v46, 1e-24  ;;  %v146_v51 = vmax.f32 %v119_v47, 1e-24 }
  0xd0   :  { %403 = vrsqrt.f32 %v147_v48 }
  0xd1   :  { %v125_v49 = vpop.xlane.xlu1 %124  ;;  %v123_v50 = vpop.xlane.xlu0 %122  ;;  %405 = vrsqrt.f32 %v146_v51 }
  0xd2   :  { %v396_v52 = vpop.eup %395  ;;  %v149_v60 = vmax.f32 %v125_v49, 1e-24  ;;  %v148_v3 = vmax.f32 %v123_v50, 1e-24 }
  0xd3   :  { %v174_v56 = vmul.f32 %v396_v52, %v573_v0 }
  0xd4   :  { %407 = vrsqrt.f32 %v149_v60 }
  0xd5   :  { %v129_v53 = vpop.xlane.xlu1 %128  ;;  %v127_v54 = vpop.xlane.xlu0 %126  ;;  %409 = vrsqrt.f32 %v148_v3 }
  0xd6   :  { %v398_v55 = vpop.eup %397  ;;  %v151_v14 = vmax.f32 %v129_v53, 1e-24  ;;  %v150_v19 = vmax.f32 %v127_v54, 1e-24 }
  0xd7   :  { %v175_v57 = vmul.f32 %v398_v55, %v577_v2  ;;  %v400_v58 = vpop.eup %399 }
  0xd8   :  { %v402_v63 = vpop.eup %401  ;;  %v176_v4 = vmul.f32 %v400_v58, %v575_v1  ;;  %411 = vrsqrt.f32 %v151_v14 }
  0xd9   :  { %v361_v59 = vpack.c.bf16 %v175_v57, %v174_v56  ;;  %v133_v61 = vpop.xlane.xlu1 %132  ;;  %v131_v62 = vpop.xlane.xlu0 %130  ;;  %v177_v6 = vmul.f32 %v402_v63, %v583_v5  ;;  %413 = vrsqrt.f32 %v150_v19 }
  0xda   :  { %v404_v0 = vpop.eup %403  ;;  %v153_v36 = vmax.f32 %v133_v61, 1e-24  ;;  %v152_v37 = vmax.f32 %v131_v62, 1e-24 }
  0xdb   :  { %362 = vmatpush3.bf16.xpose.msra.mxu0 %v361_v59  ;;  %v406_v2 = vpop.eup %405  ;;  %v364_v11 = vpack.c.bf16 %v177_v6, %v176_v4  ;;  %v179_v23 = vmul.f32 %v404_v0, %v589_v8 }
  0xdc   :  { %363 = vmatprep.subr.bf16.mxu0 %v512_v34  ;;  %v178_v22 = vmul.f32 %v406_v2, %v591_v9 }
  0xdd   :  { %v137_v7 = vpop.xlane.xlu1 %136  ;;  %v135_v10 = vpop.xlane.xlu0 %134 }
  0xde   :  { %v408_v30 = vpop.eup %407  ;;  %v367_v31 = vpack.c.bf16 %v179_v23, %v178_v22  ;;  %v155_v41 = vmax.f32 %v137_v7, 1e-24  ;;  %v154_v43 = vmax.f32 %v135_v10, 1e-24 }
  0xdf   :  { %v410_v35 = vpop.eup %409  ;;  %v181_v8 = vmul.f32 %v408_v30, %v597_v12 }
  0xe0   :  { %v180_v9 = vmul.f32 %v410_v35, %v599_v13 }
  0xe1   :  { %v141_v15 = vpop.xlane.xlu1 %140  ;;  %v139_v18 = vpop.xlane.xlu0 %138 }
  0xe2   :  { %v412_v38 = vpop.eup %411  ;;  %v370_v39 = vpack.c.bf16 %v181_v8, %v180_v9  ;;  %v157_v52 = vmax.f32 %v141_v15, 1e-24  ;;  %v156_v53 = vmax.f32 %v139_v18, 1e-24 }
  0xe3   :  { %365 = vmatpush3.bf16.xpose.msra.mxu0 %v364_v11  ;;  %v414_v40 = vpop.eup %413  ;;  %v183_v46 = vmul.f32 %v412_v38, %v605_v16 }
  0xe4   :  { %366 = vmatprep.subr.bf16.mxu0 %v512_v34  ;;  %v182_v45 = vmul.f32 %v414_v40, %v607_v17 }
  0xe5   :  { %v59_v1 = vpop.xlane.xlu0 %58  ;;  %v65_v5 = vpop.xlane.xlu1 %64 }
  0xe6   :  { %v60_v26 = vmax.f32 %v59_v1, 1e-24  ;;  %v66_v27 = vmax.f32 %v65_v5, 1e-24  ;;  %v373_v49 = vpack.c.bf16 %v183_v46, %v182_v45 }
  0xe8   :  { %415 = vrsqrt.f32 %v60_v26 }
  0xe9   :  { %417 = vrsqrt.f32 %v66_v27 }
  0xea   :  { %419 = vrsqrt.f32 %v153_v36 }
  0xeb   :  { %368 = vmatpush3.bf16.xpose.msra.mxu0 %v367_v31  ;;  %421 = vrsqrt.f32 %v152_v37 }
  0xec   :  { %369 = vmatprep.subr.bf16.mxu0 %v512_v34  ;;  %423 = vrsqrt.f32 %v155_v41 }
  0xed   :  { %425 = vrsqrt.f32 %v154_v43 }
  0xee   :  { %427 = vrsqrt.f32 %v157_v52 }
  0xef   :  { %429 = vrsqrt.f32 %v156_v53 }
  0xf2   :  { %v416_v42 = vpop.eup %415 }
  0xf3   :  { %v418_v44 = vpop.eup %417  ;;  %371 = vmatpush3.bf16.xpose.msra.mxu0 %v370_v39  ;;  %v62_v47 = vmul.f32 10.0, %v416_v42 }
  0xf4   :  { %372 = vmatprep.subr.bf16.mxu0 %v512_v34  ;;  %v69_v12 = vmul.f32 %v418_v44, %v639_v33  ;;  %v420_v48 = vpop.eup %419 }
  0xf5   :  { %v68_v13 = vmul.f32 %v62_v47, %v637_v32  ;;  %v422_v51 = vpop.eup %421  ;;  %v185_v16 = vmul.f32 %v420_v48, %v613_v20 }
  0xf6   :  { %v184_v17 = vmul.f32 %v422_v51, %v615_v21  ;;  %v424_v33 = vpop.eup %423 }
  0xf7   :  { %v70_v50 = vmul.f32 %v69_v12, %v68_v13  ;;  %v426_v32 = vpop.eup %425  ;;  %v187_v56 = vmul.f32 %v424_v33, %v621_v24  ;;  %v262_v24 = vlaneseq }
  0xf8   :  { %v376_v54 = vpack.c.bf16 %v185_v16, %v184_v17  ;;  %v186_v55 = vmul.f32 %v426_v32, %v623_v25  ;;  %v428_v57 = vpop.eup %427 }
  0xf9   :  { %71 = vadd.xlane.f32.xlu0 %v70_v50  ;;  %v430_v59 = vpop.eup %429  ;;  %v189_v21 = vmul.f32 %v428_v57, %v629_v28  ;;  %v263_v25 = vand.u32 127, %v262_v24  ;;  %v516_v28 = vmov 1.0  }
  0xfa   :  { %v379_v58 = vpack.c.bf16 %v187_v56, %v186_v55  ;;  %v188_v20 = vmul.f32 %v430_v59, %v631_v29  ;;  %v515_v29 = vmov 0   ;;  %77 = vst.msk [vmem:[#allocation4] sm:$0xff] %vm74_vm1, %v516_v28 }
  0xfb   :  { %374 = vmatpush3.bf16.xpose.msra.mxu0 %v373_v49  ;;  %vm266_vm2 = vcmp.lt.s32.totalorder %v263_v25, 16  ;;  %394 = vset.pattern.permute.xlu0 %v515_v29 }
  0xfc   :  { %375 = vmatprep.subr.bf16.mxu0 %v512_v34  ;;  %v382_v60 = vpack.c.bf16 %v189_v21, %v188_v20 }
 0x101   :  { %v275_v18 = vld [vmem:[#allocation4] sm:$0xff] }
 0x103   :  { %377 = vmatpush3.bf16.xpose.msra.mxu0 %v376_v54 }
 0x104   :  { %378 = vmatprep.subr.bf16.mxu0 %v512_v34 }
 0x10b   :  { %380 = vmatpush3.bf16.xpose.msra.mxu0 %v379_v58 }
 0x10c   :  { %381 = vmatprep.subr.bf16.mxu0 %v512_v34 }
 0x113   :  { %383 = vmatpush3.bf16.xpose.msra.mxu0 %v382_v60 }
 0x11a   :  { %358 = vmatmul.mubr.f32.vlgmr.msra.gmra.mrb[0].mxu0 %v68_v13 }
 0x186   :  { %v72_v61 = vpop.xlane.xlu0 %71 }
 0x187   :  { %75 = vst.msk [vmem:[#allocation5] sm:$0xff] %vm74_vm1, %v72_v61  ;;  %76 = vst.msk [vmem:[#allocation3] sm:$0xff] %vm74_vm1, %v72_v61 }
 0x18e   :  { %v268_v4 = vld [vmem:[#allocation3] sm:$0xff]  ;;  %v299_v31 = vld [vmem:[#allocation5] sm:$0xff] }
 0x1ed   :  { %v257_v62 = vpop.f32.mrb[0].mxu0 }
 0x1ee   :  { %v359_v63 = vpop.f32.mrb[1].mxu0  ;;  %v267_v3 = vsel %vm266_vm2, %v257_v62, -1e+30 }
 0x1ef   :  { %269 = vmax.xlane.f32.xlu1 %v267_v3 }
 0x27c   :  { %v270_v34 = vpop.xlane.xlu1 %269 }
 0x27d   :  { %v271_v6 = vmax.f32 %v268_v4, %v270_v34 }
 0x27f   :  { %v272_v7 = vsub.f32 %v268_v4, %v271_v6  ;;  %290 = vst.msk [vmem:[#allocation3] sm:$0xff] %vm74_vm1, %v271_v6  ;;  %279 = vperm.xlu0 %394, %v271_v6  }
 0x281   :  { %v273_v14 = vmul.f32 1.442695, %v272_v7 }
 0x286   :  { %v294_v27 = vld [vmem:[#allocation3] sm:$0xff] }
 0x2fe   :  { %v280_v10 = vpop.permute.xlu0 %279 }
 0x2ff   :  { %v282_v0 = vsub.f32 %v267_v3, %v280_v10 }
 0x301   :  { %v283_v2 = vmul.f32 1.442695, %v282_v0 }
 0x303   :  { %431 = vpow2.f32 %v283_v2 }
 0x304   :  { %433 = vpow2.f32 %v273_v14 }
 0x30d   :  { %v432_v11 = vpop.eup %431 }
 0x30e   :  { %285 = vadd.xlane.f32.xlu1 %v432_v11  ;;  %v434_v15 = vpop.eup %433 }
 0x30f   :  { %v276_v19 = vmul.f32 %v434_v15, %v275_v18 }
 0x39b   :  { %v286_v22 = vpop.xlane.xlu1 %285 }
 0x39c   :  { %v287_v23 = vadd.f32 %v286_v22, %v276_v19 }
 0x39e   :  { %289 = vst.msk [vmem:[#allocation4] sm:$0xff] %vm74_vm1, %v287_v23 }
 0x3a5   :  { %v295_v1 = vld [vmem:[#allocation4] sm:$0xff] }
 0x3a6   :  { %435 = vlog2.f32 %v295_v1 }
 0x3b0   :  { %v436_v5 = vpop.eup %435 }
 0x3b1   :  { %v297_v26 = vmul.f32 0.6931472, %v436_v5 }
 0x3b3   :  { %v298_v30 = vadd.f32 %v297_v26, %v294_v27 }
 0x3b5   :  { %v300_v35 = vsub.f32 %v298_v30, %v299_v31 }
 0x3b7   :  { %301 = vst.msk [vmem:[%s683_s3] sm:$0xff] %vm74_vm1, %v300_v35 }
 0x3b8   :  { %306 = vsyncpa [#allocation7], 1 }
 0x3b9   :  { %307 = vsyncpa [#allocation9], 1 }

</bundles_post_ra>
